<compile_context>
chip_gen: v5e
topology: v5e:2x2
jax: 0.10.0
libtpu: 0.0.40
codegen_flags: <defaults>
</compile_context>

<pallas_src>
import math
from functools import partial

import jax
import jax.numpy as jnp
from jax import lax
from jax.experimental import pallas as pl
from jax.experimental.pallas import tpu as pltpu


def _normed_linear_kernel(eta_ref, x_ref, w_ref, xn_ref, wn_ref, o_ref,
                          acc_ref, *, cast_to_bf16=False):
    """One (B-tile, OUT-tile) output block, accumulated over K tiles.

    eta_ref : SMEM (1,)      f32 scale (1.0 when scale=False)
    x_ref   : VMEM (tm, tk)  input tile   (native dtype)
    w_ref   : VMEM (tn, tk)  weight tile  (native dtype)
    xn_ref  : VMEM (tm, 1)   f32 precomputed sum(x^2) per batch row
    wn_ref  : VMEM (1, tn)   f32 precomputed sum(w^2) per output row
    o_ref   : VMEM (tm, tn)  output tile
    acc_ref : VMEM (tm, tn)  f32 raw-matmul accumulator
    """
    k = pl.program_id(2)

    @pl.when(k == 0)
    def _init():
        acc_ref[...] = jnp.zeros_like(acc_ref)

    x = x_ref[...]          # (tm, tk)
    w = w_ref[...]          # (tn, tk)
    if cast_to_bf16 and x.dtype == jnp.float32:
        # Optional v5e throughput mode: bf16 MXU operands, f32 accumulation.
        x = x.astype(jnp.bfloat16)
        w = w.astype(jnp.bfloat16)

    # Raw (un-normalized) partial matmul on the MXU: contract the feature axis
    # of both operands directly -> no transpose, f32 accumulation.
    acc_ref[...] += lax.dot_general(
        x, w, dimension_numbers=(((1,), (1,)), ((), ())),
        preferred_element_type=jnp.float32)

    @pl.when(k == pl.num_programs(2) - 1)
    def _finalize():
        # F.normalize(v): v / max(||v||, eps) == v * rsqrt(max(||v||^2, eps^2))
        eps2 = jnp.float32(1e-24)          # (1e-12)**2
        row_scale = eta_ref[0] * lax.rsqrt(jnp.maximum(xn_ref[...], eps2))  # (tm,1)
        col_scale = lax.rsqrt(jnp.maximum(wn_ref[...], eps2))               # (1,tn)
        o_ref[...] = (acc_ref[...] * row_scale * col_scale).astype(o_ref.dtype)


def _round_up(n, m):
    return ((n + m - 1) // m) * m


def _select_tiles(B, OUT, IN, in_bytes, out_bytes, bm, bn, bk, vmem_budget):
    """Pick lane-dense tiles that fit the VMEM budget."""
    B8 = _round_up(B, 8)
    OUT128 = _round_up(OUT, 128)
    IN128 = _round_up(IN, 128)

    tk = min(_round_up(bk, 128), IN128)
    tn = min(_round_up(bn, 128), OUT128)
    # Modest batch: take it whole so the weight matrix streams from HBM once.
    if B8 <= max(_round_up(bm, 8), 1024):
        tm = B8
    else:
        tm = _round_up(bm, 8)

    # Try to keep >= 2 blocks on at least one parallel axis so the grid can
    # shard across v7x's two TensorCores (only when the shape allows it).
    if pl.cdiv(B8, tm) == 1 and pl.cdiv(OUT128, tn) == 1:
        if OUT128 >= 256:
            tn = max(128, (OUT128 // 2 // 128) * 128)
        elif B8 >= 16:
            tm = max(8, (B8 // 2 // 8) * 8)

    def vmem_bytes(tm_, tn_, tk_):
        return (2 * (tm_ * tk_ + tn_ * tk_) * in_bytes   # double-buffered x, w
                + 2 * tm_ * tn_ * out_bytes              # double-buffered out
                + tm_ * tn_ * 4)                         # f32 accumulator

    # Shrink tk first (re-read cost is amortized), then tn, then tm.
    while vmem_bytes(tm, tn, tk) > vmem_budget:
        if tk > 512:
            tk = max(512, _round_up(tk // 2, 128))
        elif tn > 256:
            tn = max(256, _round_up(tn // 2, 128))
        elif tm > 256:
            tm = max(256, _round_up(tm // 2, 8))
        else:
            break
    return tm, tn, tk


def normed_linear(x, weight, eta=None, scale=True, *,
                  bm=512, bn=512, bk=1024,
                  vmem_limit_bytes=48 * 1024 * 1024,
                  buffer_count=None,
                  cast_operands_to_bf16=False):
    """Pallas TPU NormedLinear forward.

    x: (B, IN); weight: (OUT, IN); eta: scalar / (1,) array when scale=True.
    Returns (B, OUT) in x.dtype.
    """
    B, IN = x.shape
    OUT, IN_w = weight.shape
    assert IN == IN_w, "in_features mismatch"

    if scale:
        assert eta is not None
        eta_arr = jnp.asarray(eta, jnp.float32).reshape((1,))
    else:
        eta_arr = jnp.ones((1,), jnp.float32)

    in_bytes = x.dtype.itemsize
    out_bytes = x.dtype.itemsize
    tm, tn, tk = _select_tiles(B, OUT, IN, in_bytes, out_bytes,
                               bm, bn, bk, int(vmem_limit_bytes * 0.85))

    B_p = _round_up(B, tm)
    OUT_p = _round_up(OUT, tn)
    IN_p = _round_up(IN, tk)

    # Zero padding is exact: padded K columns add 0 to dots and norms; padded
    # B/OUT rows produce rows/cols that are sliced off below.
    x_p = x if (B_p == B and IN_p == IN) else jnp.pad(
        x, ((0, B_p - B), (0, IN_p - IN)))
    w_p = weight if (OUT_p == OUT and IN_p == IN) else jnp.pad(
        weight, ((0, OUT_p - OUT), (0, IN_p - IN)))

    # Hoisted squared row norms (f32), computed once from the same padded
    # tensors fed to the kernel.  Tiny relative to the matmul traffic.
    xf = x_p.astype(jnp.float32)
    wf = w_p.astype(jnp.float32)
    x_norm2 = jnp.sum(xf * xf, axis=1, keepdims=True)        # (B_p, 1)
    w_norm2 = jnp.sum(wf * wf, axis=1).reshape(1, OUT_p)     # (1, OUT_p)

    grid = (B_p // tm, OUT_p // tn, IN_p // tk)

    # Optional deeper prefetch for the streamed matmul operands (e.g. 3 on
    # v6e if DMA is still exposed after enlarging tiles).
    stream_kwargs = {}
    if buffer_count is not None and buffer_count != 2:
        stream_kwargs = dict(pipeline_mode=pl.Buffered(buffer_count))

    kernel = partial(_normed_linear_kernel, cast_to_bf16=cast_operands_to_bf16)

    out_p = pl.pallas_call(
        kernel,
        out_shape=jax.ShapeDtypeStruct((B_p, OUT_p), x.dtype),
        grid_spec=pltpu.PrefetchScalarGridSpec(
            num_scalar_prefetch=0,
            grid=grid,
            in_specs=[
                pl.BlockSpec(memory_space=pltpu.SMEM),                        # eta
                pl.BlockSpec((tm, tk), lambda i, j, k: (i, k), **stream_kwargs),  # x
                pl.BlockSpec((tn, tk), lambda i, j, k: (j, k), **stream_kwargs),  # w
                pl.BlockSpec((tm, 1), lambda i, j, k: (i, 0)),                # ||x||^2
                pl.BlockSpec((1, tn), lambda i, j, k: (0, j)),                # ||w||^2
            ],
            out_specs=pl.BlockSpec((tm, tn), lambda i, j, k: (i, j)),
            scratch_shapes=[
                pltpu.VMEM((tm, tn), jnp.float32),   # f32 matmul accumulator
            ],
        ),
        compiler_params=pltpu.CompilerParams(
            # B / OUT tiles are independent (megacore-parallel on v7x);
            # the K reduction stays sequential and last.
            dimension_semantics=("parallel", "parallel", "arbitrary"),
            vmem_limit_bytes=vmem_limit_bytes,
        ),
    )(eta_arr, x_p, w_p, x_norm2, w_norm2)

    return out_p[:B, :OUT]


def _ref(x, w, eta):
    """Plain-JAX reference mirroring F.normalize + F.linear semantics."""
    eps = 1e-12
    xn = x / jnp.maximum(jnp.linalg.norm(x, axis=1, keepdims=True), eps)
    wn = w / jnp.maximum(jnp.linalg.norm(w, axis=1, keepdims=True), eps)
    return eta * (xn @ wn.T)


if __name__ == "__main__":
    key = jax.random.PRNGKey(0)

    # --- Test 1: small shapes consistent with the module (batch=8, in=32, out=16)
    batch, in_features, out_features = 8, 32, 16
    kx, kw, key = jax.random.split(key, 3)
    stdv = 1.0 / math.sqrt(in_features)
    weight = jax.random.uniform(
        kw, (out_features, in_features), jnp.float32, -stdv, stdv)
    eta = jnp.ones((1,), jnp.float32)
    x = jax.random.normal(kx, (batch, in_features), jnp.float32)

    out = jax.block_until_ready(normed_linear(x, weight, eta, scale=True))
    expected = _ref(x, weight, eta[0])
    assert out.shape == (batch, out_features)
    assert jnp.allclose(out, expected, atol=1e-5, rtol=1e-5)

    # --- Test 2: exercise the multi-tile grid (several OUT and K tiles, f32
    # accumulator carried across K, per-i / per-j norm tiles).
    batch2, in2, out2 = 8, 512, 256
    kx2, kw2 = jax.random.split(key)
    stdv2 = 1.0 / math.sqrt(in2)
    weight2 = jax.random.uniform(kw2, (out2, in2), jnp.float32, -stdv2, stdv2)
    x2 = jax.random.normal(kx2, (batch2, in2), jnp.float32)

    out2_arr = jax.block_until_ready(
        normed_linear(x2, weight2, eta, scale=True, bm=8, bn=128, bk=128))
    expected2 = _ref(x2, weight2, eta[0])
    assert out2_arr.shape == (batch2, out2)
    assert jnp.allclose(out2_arr, expected2, atol=1e-4, rtol=1e-4)

    print("KERNEL_OK")
</pallas_src>

<mosaic_0001>
module attributes {stable_mosaic.version = 11 : i64} {
  func.func @_normed_linear_kernel(%arg0: i32, %arg1: i32, %arg2: i32, %arg3: memref<1xf32, #tpu.memory_space<smem>>, %arg4: memref<8x128xf32, #tpu.memory_space<vmem>>, %arg5: memref<128x128xf32, #tpu.memory_space<vmem>>, %arg6: memref<8x1xf32, #tpu.memory_space<vmem>>, %arg7: memref<1x128xf32, #tpu.memory_space<vmem>>, %arg8: memref<8x128xf32, #tpu.memory_space<vmem>>, %arg9: memref<8x128xf32, #tpu.memory_space<vmem>>) attributes {dimension_semantics = [#tpu.dimension_semantics<parallel>, #tpu.dimension_semantics<parallel>, #tpu.dimension_semantics<arbitrary>], iteration_bounds = array<i64: 1, 1, 1>, scalar_prefetch = 0 : i64, scratch_operands = 1 : i64, tpu.core_type = #tpu.core_type<tc>, window_params = [{transform_indices = @transform_0, window_bounds = array<i64: 1>}, {transform_indices = @transform_1, window_bounds = array<i64: 8, 128>}, {transform_indices = @transform_2, window_bounds = array<i64: 128, 128>}, {transform_indices = @transform_3, window_bounds = array<i64: 8, 1>}, {transform_indices = @transform_4, window_bounds = array<i64: 1, 128>}, {transform_indices = @transform_5, window_bounds = array<i64: 8, 128>}]} {
    %c0_i32 = arith.constant 0 : i32
    %0 = arith.cmpi eq, %arg2, %c0_i32 : i32
    %1 = arith.extui %0 : i1 to i32
    %c0_i32_0 = arith.constant 0 : i32
    %2 = arith.cmpi ne, %1, %c0_i32_0 : i32
    scf.if %2 {
      %cst_10 = arith.constant 0.000000e+00 : f32
      %12 = vector.broadcast %cst_10 : f32 to vector<8x128xf32>
      %c0_11 = arith.constant 0 : index
      %c0_12 = arith.constant 0 : index
      %13 = vector.load %arg9[%c0_11, %c0_12] : memref<8x128xf32, #tpu.memory_space<vmem>>, vector<8x128xf32>
      tpu.vector_store %arg9[%c0_11, %c0_12], %12 {strides = array<i32>} : memref<8x128xf32, #tpu.memory_space<vmem>>, vector<8x128xf32>,
    } else {
    }
    %c0 = arith.constant 0 : index
    %c0_1 = arith.constant 0 : index
    %3 = vector.load %arg4[%c0, %c0_1] : memref<8x128xf32, #tpu.memory_space<vmem>>, vector<8x128xf32>
    %c0_2 = arith.constant 0 : index
    %c0_3 = arith.constant 0 : index
    %4 = vector.load %arg5[%c0_2, %c0_3] : memref<128x128xf32, #tpu.memory_space<vmem>>, vector<128x128xf32>
    %c0_4 = arith.constant 0 : index
    %c0_5 = arith.constant 0 : index
    %5 = vector.load %arg9[%c0_4, %c0_5] : memref<8x128xf32, #tpu.memory_space<vmem>>, vector<8x128xf32>
    %cst = arith.constant dense<0.000000e+00> : vector<8x128xf32>
    %6 = tpu.matmul %3, %4, %cst {dimension_numbers = #tpu.dot_dimension_numbers<[1], [1], [0], [0], [0, 0, 1, 0], [], []>} : vector<8x128xf32>, vector<128x128xf32>, vector<8x128xf32> -> vector<8x128xf32>
    %7 = arith.addf %5, %6 : vector<8x128xf32>
    %c0_6 = arith.constant 0 : index
    %c0_7 = arith.constant 0 : index
    %8 = vector.load %arg9[%c0_6, %c0_7] : memref<8x128xf32, #tpu.memory_space<vmem>>, vector<8x128xf32>
    tpu.vector_store %arg9[%c0_6, %c0_7], %7 {strides = array<i32>} : memref<8x128xf32, #tpu.memory_space<vmem>>, vector<8x128xf32>,
    %c0_i32_8 = arith.constant 0 : i32
    %9 = arith.cmpi eq, %arg2, %c0_i32_8 : i32
    %10 = arith.extui %9 : i1 to i32
    %c0_i32_9 = arith.constant 0 : i32
    %11 = arith.cmpi ne, %10, %c0_i32_9 : i32
    scf.if %11 {
      %c0_10 = arith.constant 0 : index
      %12 = memref.load %arg3[%c0_10] : memref<1xf32, #tpu.memory_space<smem>>
      %c0_11 = arith.constant 0 : index
      %c0_12 = arith.constant 0 : index
      %13 = vector.load %arg6[%c0_11, %c0_12] : memref<8x1xf32, #tpu.memory_space<vmem>>, vector<8x1xf32>
      %cst_13 = arith.constant 1.000000e-24 : f32
      %14 = vector.broadcast %cst_13 : f32 to vector<8x1xf32>
      %15 = arith.maximumf %13, %14 : vector<8x1xf32>
      %16 = math.rsqrt %15 : vector<8x1xf32>
      %17 = vector.broadcast %12 : f32 to vector<8x1xf32>
      %18 = arith.mulf %17, %16 : vector<8x1xf32>
      %c0_14 = arith.constant 0 : index
      %c0_15 = arith.constant 0 : index
      %19 = vector.load %arg7[%c0_14, %c0_15] : memref<1x128xf32, #tpu.memory_space<vmem>>, vector<1x128xf32>
      %cst_16 = arith.constant 1.000000e-24 : f32
      %20 = vector.broadcast %cst_16 : f32 to vector<1x128xf32>
      %21 = arith.maximumf %19, %20 : vector<1x128xf32>
      %22 = math.rsqrt %21 : vector<1x128xf32>
      %c0_17 = arith.constant 0 : index
      %c0_18 = arith.constant 0 : index
      %23 = vector.load %arg9[%c0_17, %c0_18] : memref<8x128xf32, #tpu.memory_space<vmem>>, vector<8x128xf32>
      %24 = vector.broadcast %18 : vector<8x1xf32> to vector<8x128xf32>
      %25 = arith.mulf %23, %24 : vector<8x128xf32>
      %26 = vector.broadcast %22 : vector<1x128xf32> to vector<8x128xf32>
      %27 = arith.mulf %25, %26 : vector<8x128xf32>
      %c0_19 = arith.constant 0 : index
      %c0_20 = arith.constant 0 : index
      %28 = vector.load %arg8[%c0_19, %c0_20] : memref<8x128xf32, #tpu.memory_space<vmem>>, vector<8x128xf32>
      tpu.vector_store %arg8[%c0_19, %c0_20], %27 {strides = array<i32>} : memref<8x128xf32, #tpu.memory_space<vmem>>, vector<8x128xf32>,
    } else {
    }
    return
  }
  func.func @transform_0(%arg0: i32, %arg1: i32, %arg2: i32) -> i32 {
    %c0_i32 = arith.constant 0 : i32
    %c0_i32_0 = arith.constant 0 : i32
    return %c0_i32 : i32
  }
  func.func @transform_1(%arg0: i32, %arg1: i32, %arg2: i32) -> (i32, i32) {
    %c0_i32 = arith.constant 0 : i32
    return %arg0, %arg2 : i32, i32
  }
  func.func @transform_2(%arg0: i32, %arg1: i32, %arg2: i32) -> (i32, i32) {
    %c0_i32 = arith.constant 0 : i32
    return %arg1, %arg2 : i32, i32
  }
  func.func @transform_3(%arg0: i32, %arg1: i32, %arg2: i32) -> (i32, i32) {
    %c0_i32 = arith.constant 0 : i32
    %c0_i32_0 = arith.constant 0 : i32
    return %arg0, %c0_i32 : i32, i32
  }
  func.func @transform_4(%arg0: i32, %arg1: i32, %arg2: i32) -> (i32, i32) {
    %c0_i32 = arith.constant 0 : i32
    %c0_i32_0 = arith.constant 0 : i32
    return %c0_i32, %arg1 : i32, i32
  }
  func.func @transform_5(%arg0: i32, %arg1: i32, %arg2: i32) -> (i32, i32) {
    %c0_i32 = arith.constant 0 : i32
    return %arg0, %arg1 : i32, i32
  }
}

</mosaic_0001>

<bundles_post_ra>
// kernel: tpu_custom_call.1
= control target key start
LH: loop header
LB: loop body
LE: loop exit
PB: predicated region body
PF: predicated region fallthrough
CT: control target
= control target key end

     0   :  { %11 = vsyncpa [#allocation5], 0  ;;  %s257_s0 = inlined_call_operand.<no memory space> [shape: f32[1], index: 0, kind: input, shape index: {}]   ;;  %s258_s1 = inlined_call_operand.vmem [shape: f32[8,128], index: 1, kind: input, shape index: {}]   ;;  %s259_s2 = inlined_call_operand.hbm [shape: f32[128,128], index: 2, kind: input, shape index: {}]   ;;  %s260_s3 = inlined_call_operand.vmem [shape: f32[8,1], index: 3, kind: input, shape index: {}]   ;;  %s261_s4 = inlined_call_operand.vmem [shape: f32[1,128], index: 4, kind: input, shape index: {}]   ;;  %s262_s5 = inlined_call_operand.hbm [shape: f32[8,128], index: 5, kind: output, shape index: {}]  }
   0x1   :  { %12 = vsyncpa [#allocation6], 0  ;;  %s21_s20 = sshll.u32 %s259_s2, 4  ;;  %s204_s21 = smov [#allocation4]   ;;  %s22_s20 = int_to_ptr.hbm [resolvable:$true] %s21_s20 }
   0x2   :  { %s23_s22 = sshll.u32 %s204_s21, 4  ;;  %s205_s23 = smov 128   ;;  %s24_s22 = int_to_ptr.vmem [resolvable:$true] %s23_s22 }
   0x3   :  { %s206_s24 = smov 8  }
   0x4   :  { %29 = dma.hbm_to_vmem [thread:$0]  %s22_s20, 2048, %s24_s22, [#allocation5], %s205_s23, %s205_s23, %s206_s24  }
   0x5   :  { %200 = dma.done.wait [#allocation5], 2048  }
   0x6   :  { %201 = vsyncadd [#allocation5], 4294965248  ;;  %v59_v0 = vld [vmem:[#allocation4 + $0x78] sm:$0xff]  ;;  %v58_v1 = vld [vmem:[#allocation4 + $0x70] sm:$0xff]  ;;  %v207_v14 = vmov 0   ;;  %v99_v20 = vstv %s257_s0 }
   0x7   :  { %61 = vmatpush.xpose.msra.mxu0 %v59_v0  ;;  %v57_v2 = vld [vmem:[#allocation4 + $0x68] sm:$0xff]  ;;  %v56_v3 = vld [vmem:[#allocation4 + $0x60] sm:$0xff]  ;;  %v55_v4 = vld [vmem:[#allocation4 + $0x58] sm:$0xff]  ;;  %147 = vset.pattern.permute.xlu0 %v207_v14 }
   0x8   :  { %v54_v5 = vld [vmem:[#allocation4 + $0x50] sm:$0xff]  ;;  %v87_v6 = vld [vmem:[%s260_s3] sm:$0xff]  ;;  %v53_v8 = vld [vmem:[#allocation4 + $0x48] sm:$0xff] }
   0x9   :  { %v88_v7 = vmax.f32 %v87_v6, 1e-24  ;;  %v52_v9 = vld [vmem:[#allocation4 + $0x40] sm:$0xff]  ;;  %v51_v11 = vld [vmem:[#allocation4 + $0x38] sm:$0xff]  ;;  %v50_v15 = vld [vmem:[#allocation4 + $0x30] sm:$0xff] }
   0xa   :  { %v49_v18 = vld [vmem:[#allocation4 + $0x28] sm:$0xff]  ;;  %v48_v23 = vld [vmem:[#allocation4 + $0x20] sm:$0xff]  ;;  %v47_v24 = vld [vmem:[#allocation4 + $0x18] sm:$0xff] }
   0xb   :  { %62 = vmatpush.xpose.msra.mxu0 %v58_v1  ;;  %148 = vrsqrt.f32 %v88_v7  ;;  %vm95_vm0 = vweird.f32 %v88_v7  ;;  %v46_v25 = vld [vmem:[#allocation4 + $0x10] sm:$0xff]  ;;  %v45_v26 = vld [vmem:[#allocation4 + $0x8] sm:$0xff]  ;;  %v44_v27 = vld [vmem:[#allocation4] sm:$0xff] }
   0xc   :  { %v43_v28 = vld [vmem:[%s258_s1] sm:$0xff]  ;;  %s208_s1 = smov [#allocation7]  }
   0xd   :  { %v101_v29 = vld [vmem:[%s261_s4] sm:$0x1]  ;;  %s130_s30 = sshll.u32 %s208_s1, 4  ;;  %s132_s4 = sshll.u32 %s262_s5, 4  ;;  %s131_s30 = int_to_ptr.vmem [resolvable:$true] %s130_s30  ;;  %s133_s4 = int_to_ptr.hbm [resolvable:$true] %s132_s4 }
   0xe   :  { %v102_v30 = vmax.f32 %v101_v29, 1e-24 }
   0xf   :  { %63 = vmatpush.xpose.msra.mxu0 %v57_v2 }
  0x10   :  { %150 = vrsqrt.f32 %v102_v30  ;;  %vm109_vm3 = vweird.f32 %v102_v30 }
  0x11   :  { %v149_v10 = vpop.eup %148 }
  0x12   :  { %v90_v12 = vmul.f32 %v149_v10, %v88_v7  ;;  %vm96_vm1 = vweird.f32 %v149_v10 }
  0x13   :  { %64 = vmatpush.xpose.msra.mxu0 %v56_v3  ;;  %vm97_vm2 = vmor %vm95_vm0, %vm96_vm1 }
  0x14   :  { %v91_v13 = vmul.f32 %v149_v10, %v90_v12 }
  0x16   :  { %v92_v16 = vmul.f32 0.5, %v91_v13  ;;  %v151_v31 = vpop.eup %150 }
  0x17   :  { %65 = vmatpush.xpose.msra.mxu0 %v55_v4  ;;  %v104_v32 = vmul.f32 %v151_v31, %v102_v30  ;;  %vm110_vm4 = vweird.f32 %v151_v31 }
  0x18   :  { %v93_v17 = vsub.f32 1.5, %v92_v16  ;;  %vm111_vm5 = vmor %vm109_vm3, %vm110_vm4 }
  0x19   :  { %v105_v33 = vmul.f32 %v151_v31, %v104_v32 }
  0x1a   :  { %v94_v19 = vmul.f32 %v149_v10, %v93_v17 }
  0x1b   :  { %66 = vmatpush.xpose.msra.mxu0 %v54_v5  ;;  %v106_v34 = vmul.f32 0.5, %v105_v33 }
  0x1c   :  { %v98_v21 = vsel %vm97_vm2, %v149_v10, %v94_v19 }
  0x1d   :  { %v100_v22 = vmul.f32 %v99_v20, %v98_v21  ;;  %v107_v35 = vsub.f32 1.5, %v106_v34 }
  0x1f   :  { %67 = vmatpush.xpose.msra.mxu0 %v53_v8  ;;  %116 = vperm.xlu0 %147, %v100_v22   ;;  %v108_v36 = vmul.f32 %v151_v31, %v107_v35 }
  0x21   :  { %v112_v37 = vsel %vm111_vm5, %v151_v31, %v108_v36 }
  0x22   :  { %v121_v39 = vperm.slane %v112_v37, 0 }
  0x23   :  { %68 = vmatpush.xpose.msra.mxu0 %v52_v9 }
  0x27   :  { %69 = vmatpush.xpose.msra.mxu0 %v51_v11 }
  0x2b   :  { %70 = vmatpush.xpose.msra.mxu0 %v50_v15 }
  0x2f   :  { %71 = vmatpush.xpose.msra.mxu0 %v49_v18 }
  0x33   :  { %72 = vmatpush.xpose.msra.mxu0 %v48_v23 }
  0x37   :  { %73 = vmatpush.xpose.msra.mxu0 %v47_v24 }
  0x3b   :  { %74 = vmatpush.xpose.msra.mxu0 %v46_v25 }
  0x3f   :  { %75 = vmatpush.xpose.msra.mxu0 %v45_v26 }
  0x43   :  { %76 = vmatpush.xpose.msra.mxu0 %v44_v27 }
  0x46   :  { %77 = vmatmul.f32.vlgmr.msra.gmra.mxu0 %v43_v28 }
  0x91   :  { %v117_v38 = vpop.permute.xlu0 %116 }
  0xc3   :  { %v78_v40 = vpop.f32.mrf.mxu0 }
  0xc4   :  { %v119_v41 = vmul.f32 %v117_v38, %v78_v40 }
  0xc6   :  { %v123_v42 = vmul.f32 %v121_v39, %v119_v41 }
  0xc8   :  { %124 = vst [vmem:[#allocation7] sm:$0xff] %v123_v42 }
  0xc9   :  { %135 = dma.vmem_to_hbm [thread:$0]  %s131_s30, 128, %s133_s4, [#allocation6]  }
  0xca   :  { %202 = dma.done.wait [#allocation6], 128  }
  0xcb   :  { %203 = vsyncadd [#allocation6], 4294967168 }
  0xcc   :  { %140 = vsyncpa [#allocation5], 1 }
  0xcd   :  { %141 = vsyncpa [#allocation6], 1 }

</bundles_post_ra>
